<compile_context>
chip_gen: v7x
topology: tpu7x:2x2x1
jax: 0.10.0
libtpu: 0.0.40
codegen_flags: <defaults>
</compile_context>

<pallas_src>
import jax
import jax.numpy as jnp
from jax.experimental import pallas as pl
from jax.experimental.pallas import tpu as pltpu


def _mlp_kernel(x_ref, w1_ref, b1_ref, w2_ref, b2_ref, w3_ref, b3_ref, o_ref):
    tb = x_ref.shape[-1]  # batch tile on the lane axis

    def dense_sigmoid(h, w_ref, b_ref):
        # h: (K, TB), w: (Nout, K), b: (Nout, 1) -> (Nout, TB)
        w = w_ref[...]
        b = b_ref[...]
        n_out, k = w.shape
        acc = jnp.broadcast_to(b, (n_out, tb))            # bias as accumulator init
        for kk in range(k):                               # static unroll, K <= 10
            acc = acc + w[:, kk:kk + 1] * h[kk:kk + 1, :]  # VPU broadcast-FMA
        # sigmoid(z) = 1 / (1 + exp(-z)); exp + approx-recip both go to the EUP slot
        return pl.reciprocal(1.0 + jnp.exp(-acc), approx=True)

    h0 = x_ref[...]                                # (2,  TB)
    h1 = dense_sigmoid(h0, w1_ref, b1_ref)         # (10, TB)
    h2 = dense_sigmoid(h1, w2_ref, b2_ref)         # (10, TB)
    h3 = dense_sigmoid(h2, w3_ref, b3_ref)         # (1,  TB)
    o_ref[...] = h3.astype(o_ref.dtype)


def performance_net_forward(x, params, *, tb=256):
    """x: (B, 2) float32 (PyTorch layout). params: PyTorch-layout weights
    w* = (out, in), biases b* = (out, 1). Returns (B, 1) float32."""
    B = x.shape[0]
    grid_b = pl.cdiv(B, tb)
    Bp = grid_b * tb

    # Wrapper-side layout plumbing: batch onto the lane axis, pad to tile multiple.
    xt = x.T                                        # (2, B)
    if Bp != B:
        xt = jnp.pad(xt, ((0, 0), (0, Bp - B)))     # (2, Bp)

    def full(a):
        nd = a.ndim
        return pl.BlockSpec(a.shape, lambda i: (0,) * nd)  # VMEM-resident across steps

    args = (xt, params["w1"], params["b1"], params["w2"], params["b2"],
            params["w3"], params["b3"])

    out = pl.pallas_call(
        _mlp_kernel,
        out_shape=jax.ShapeDtypeStruct((1, Bp), jnp.float32),
        grid_spec=pltpu.PrefetchScalarGridSpec(
            num_scalar_prefetch=0,
            grid=(grid_b,),
            in_specs=[pl.BlockSpec((2, tb), lambda i: (0, i))]  # batch-tiled x
                     + [full(a) for a in args[1:]],              # tiny, resident params
            out_specs=pl.BlockSpec((1, tb), lambda i: (0, i)),   # lane-dense output
        ),
        compiler_params=pltpu.CompilerParams(
            dimension_semantics=("parallel",)),                  # megacore on v7x
    )(*args)

    return out[:, :B].T                               # back to (B, 1)


def init_params(key):
    """Deterministic init mirroring nn.Linear default (uniform +-1/sqrt(fan_in)).
    Weights stored PyTorch-style (out, in); biases (out, 1)."""
    ks = jax.random.split(key, 6)

    def linear(kw, kb, fan_in, fan_out):
        bound = 1.0 / jnp.sqrt(fan_in)
        w = jax.random.uniform(kw, (fan_out, fan_in), jnp.float32, -bound, bound)
        b = jax.random.uniform(kb, (fan_out, 1), jnp.float32, -bound, bound)
        return w, b

    w1, b1 = linear(ks[0], ks[1], 2, 10)
    w2, b2 = linear(ks[2], ks[3], 10, 10)
    w3, b3 = linear(ks[4], ks[5], 10, 1)
    return dict(w1=w1, b1=b1, w2=w2, b2=b2, w3=w3, b3=b3)


def _reference_forward(x, p):
    h1 = jax.nn.sigmoid(x @ p["w1"].T + p["b1"].T)
    h2 = jax.nn.sigmoid(h1 @ p["w2"].T + p["b2"].T)
    return jax.nn.sigmoid(h2 @ p["w3"].T + p["b3"].T)


if __name__ == "__main__":
    key = jax.random.PRNGKey(0)
    k_x, k_p = jax.random.split(key)

    B = 300  # deliberately not a multiple of the tile to exercise the padding path
    x = jax.random.normal(k_x, (B, 2), dtype=jnp.float32)
    params = init_params(k_p)

    out = performance_net_forward(x, params)
    out = jax.block_until_ready(out)

    ref = _reference_forward(x, params)
    assert out.shape == (B, 1)
    # approx=True reciprocal (EUP vrcp) has ~1e-4 relative error; loosen tolerance.
    assert jnp.allclose(out, ref, atol=2e-3, rtol=2e-3)

    print("KERNEL_OK")
</pallas_src>

<mosaic_0001>
module attributes {stable_mosaic.version = 11 : i64} {
  func.func @_mlp_kernel(%arg0: i32, %arg1: memref<2x256xf32, #tpu.memory_space<vmem>>, %arg2: memref<10x2xf32, #tpu.memory_space<vmem>>, %arg3: memref<10x1xf32, #tpu.memory_space<vmem>>, %arg4: memref<10x10xf32, #tpu.memory_space<vmem>>, %arg5: memref<10x1xf32, #tpu.memory_space<vmem>>, %arg6: memref<1x10xf32, #tpu.memory_space<vmem>>, %arg7: memref<1x1xf32, #tpu.memory_space<vmem>>, %arg8: memref<1x256xf32, #tpu.memory_space<vmem>>) attributes {dimension_semantics = [#tpu.dimension_semantics<parallel>], iteration_bounds = array<i64: 2>, scalar_prefetch = 0 : i64, scratch_operands = 0 : i64, tpu.core_type = #tpu.core_type<tc>, window_params = [{transform_indices = @transform_0, window_bounds = array<i64: 2, 256>}, {pipeline_mode = #tpu.pipeline_mode<synchronous>, transform_indices = @transform_1, window_bounds = array<i64: 10, 2>}, {pipeline_mode = #tpu.pipeline_mode<synchronous>, transform_indices = @transform_2, window_bounds = array<i64: 10, 1>}, {pipeline_mode = #tpu.pipeline_mode<synchronous>, transform_indices = @transform_3, window_bounds = array<i64: 10, 10>}, {pipeline_mode = #tpu.pipeline_mode<synchronous>, transform_indices = @transform_4, window_bounds = array<i64: 10, 1>}, {pipeline_mode = #tpu.pipeline_mode<synchronous>, transform_indices = @transform_5, window_bounds = array<i64: 1, 10>}, {pipeline_mode = #tpu.pipeline_mode<synchronous>, transform_indices = @transform_6, window_bounds = array<i64: 1, 1>}, {transform_indices = @transform_7, window_bounds = array<i64: 1, 256>}]} {
    %c0 = arith.constant 0 : index
    %c0_0 = arith.constant 0 : index
    %0 = vector.load %arg1[%c0, %c0_0] : memref<2x256xf32, #tpu.memory_space<vmem>>, vector<2x256xf32>
    %c0_1 = arith.constant 0 : index
    %c0_2 = arith.constant 0 : index
    %1 = vector.load %arg2[%c0_1, %c0_2] : memref<10x2xf32, #tpu.memory_space<vmem>>, vector<10x2xf32>
    %c0_3 = arith.constant 0 : index
    %c0_4 = arith.constant 0 : index
    %2 = vector.load %arg3[%c0_3, %c0_4] : memref<10x1xf32, #tpu.memory_space<vmem>>, vector<10x1xf32>
    %3 = vector.shape_cast %2 : vector<10x1xf32> to vector<10x1xf32>
    %4 = vector.broadcast %3 : vector<10x1xf32> to vector<10x256xf32>
    %5 = vector.extract_strided_slice %1 {offsets = [0, 0], sizes = [10, 1], strides = [1, 1]} : vector<10x2xf32> to vector<10x1xf32>
    %6 = vector.extract_strided_slice %0 {offsets = [0, 0], sizes = [1, 256], strides = [1, 1]} : vector<2x256xf32> to vector<1x256xf32>
    %7 = vector.broadcast %5 : vector<10x1xf32> to vector<10x256xf32>
    %8 = vector.broadcast %6 : vector<1x256xf32> to vector<10x256xf32>
    %9 = arith.mulf %7, %8 : vector<10x256xf32>
    %10 = arith.addf %4, %9 : vector<10x256xf32>
    %11 = vector.extract_strided_slice %1 {offsets = [0, 1], sizes = [10, 1], strides = [1, 1]} : vector<10x2xf32> to vector<10x1xf32>
    %12 = vector.extract_strided_slice %0 {offsets = [1, 0], sizes = [1, 256], strides = [1, 1]} : vector<2x256xf32> to vector<1x256xf32>
    %13 = vector.broadcast %11 : vector<10x1xf32> to vector<10x256xf32>
    %14 = vector.broadcast %12 : vector<1x256xf32> to vector<10x256xf32>
    %15 = arith.mulf %13, %14 : vector<10x256xf32>
    %16 = arith.addf %10, %15 : vector<10x256xf32>
    %cst = arith.constant 0.000000e+00 : f32
    %17 = vector.broadcast %cst : f32 to vector<10x256xf32>
    %18 = arith.subf %17, %16 : vector<10x256xf32>
    %19 = math.exp %18 : vector<10x256xf32>
    %cst_5 = arith.constant 1.000000e+00 : f32
    %20 = vector.broadcast %cst_5 : f32 to vector<10x256xf32>
    %21 = arith.addf %20, %19 : vector<10x256xf32>
    %22 = tpu.reciprocal %21 {approx = true} : vector<10x256xf32> -> vector<10x256xf32>
    %c0_6 = arith.constant 0 : index
    %c0_7 = arith.constant 0 : index
    %23 = vector.load %arg4[%c0_6, %c0_7] : memref<10x10xf32, #tpu.memory_space<vmem>>, vector<10x10xf32>
    %c0_8 = arith.constant 0 : index
    %c0_9 = arith.constant 0 : index
    %24 = vector.load %arg5[%c0_8, %c0_9] : memref<10x1xf32, #tpu.memory_space<vmem>>, vector<10x1xf32>
    %25 = vector.shape_cast %24 : vector<10x1xf32> to vector<10x1xf32>
    %26 = vector.broadcast %25 : vector<10x1xf32> to vector<10x256xf32>
    %27 = vector.extract_strided_slice %23 {offsets = [0, 0], sizes = [10, 1], strides = [1, 1]} : vector<10x10xf32> to vector<10x1xf32>
    %28 = vector.extract_strided_slice %22 {offsets = [0, 0], sizes = [1, 256], strides = [1, 1]} : vector<10x256xf32> to vector<1x256xf32>
    %29 = vector.broadcast %27 : vector<10x1xf32> to vector<10x256xf32>
    %30 = vector.broadcast %28 : vector<1x256xf32> to vector<10x256xf32>
    %31 = arith.mulf %29, %30 : vector<10x256xf32>
    %32 = arith.addf %26, %31 : vector<10x256xf32>
    %33 = vector.extract_strided_slice %23 {offsets = [0, 1], sizes = [10, 1], strides = [1, 1]} : vector<10x10xf32> to vector<10x1xf32>
    %34 = vector.extract_strided_slice %22 {offsets = [1, 0], sizes = [1, 256], strides = [1, 1]} : vector<10x256xf32> to vector<1x256xf32>
    %35 = vector.broadcast %33 : vector<10x1xf32> to vector<10x256xf32>
    %36 = vector.broadcast %34 : vector<1x256xf32> to vector<10x256xf32>
    %37 = arith.mulf %35, %36 : vector<10x256xf32>
    %38 = arith.addf %32, %37 : vector<10x256xf32>
    %39 = vector.extract_strided_slice %23 {offsets = [0, 2], sizes = [10, 1], strides = [1, 1]} : vector<10x10xf32> to vector<10x1xf32>
    %40 = vector.extract_strided_slice %22 {offsets = [2, 0], sizes = [1, 256], strides = [1, 1]} : vector<10x256xf32> to vector<1x256xf32>
    %41 = vector.broadcast %39 : vector<10x1xf32> to vector<10x256xf32>
    %42 = vector.broadcast %40 : vector<1x256xf32> to vector<10x256xf32>
    %43 = arith.mulf %41, %42 : vector<10x256xf32>
    %44 = arith.addf %38, %43 : vector<10x256xf32>
    %45 = vector.extract_strided_slice %23 {offsets = [0, 3], sizes = [10, 1], strides = [1, 1]} : vector<10x10xf32> to vector<10x1xf32>
    %46 = vector.extract_strided_slice %22 {offsets = [3, 0], sizes = [1, 256], strides = [1, 1]} : vector<10x256xf32> to vector<1x256xf32>
    %47 = vector.broadcast %45 : vector<10x1xf32> to vector<10x256xf32>
    %48 = vector.broadcast %46 : vector<1x256xf32> to vector<10x256xf32>
    %49 = arith.mulf %47, %48 : vector<10x256xf32>
    %50 = arith.addf %44, %49 : vector<10x256xf32>
    %51 = vector.extract_strided_slice %23 {offsets = [0, 4], sizes = [10, 1], strides = [1, 1]} : vector<10x10xf32> to vector<10x1xf32>
    %52 = vector.extract_strided_slice %22 {offsets = [4, 0], sizes = [1, 256], strides = [1, 1]} : vector<10x256xf32> to vector<1x256xf32>
    %53 = vector.broadcast %51 : vector<10x1xf32> to vector<10x256xf32>
    %54 = vector.broadcast %52 : vector<1x256xf32> to vector<10x256xf32>
    %55 = arith.mulf %53, %54 : vector<10x256xf32>
    %56 = arith.addf %50, %55 : vector<10x256xf32>
    %57 = vector.extract_strided_slice %23 {offsets = [0, 5], sizes = [10, 1], strides = [1, 1]} : vector<10x10xf32> to vector<10x1xf32>
    %58 = vector.extract_strided_slice %22 {offsets = [5, 0], sizes = [1, 256], strides = [1, 1]} : vector<10x256xf32> to vector<1x256xf32>
    %59 = vector.broadcast %57 : vector<10x1xf32> to vector<10x256xf32>
    %60 = vector.broadcast %58 : vector<1x256xf32> to vector<10x256xf32>
    %61 = arith.mulf %59, %60 : vector<10x256xf32>
    %62 = arith.addf %56, %61 : vector<10x256xf32>
    %63 = vector.extract_strided_slice %23 {offsets = [0, 6], sizes = [10, 1], strides = [1, 1]} : vector<10x10xf32> to vector<10x1xf32>
    %64 = vector.extract_strided_slice %22 {offsets = [6, 0], sizes = [1, 256], strides = [1, 1]} : vector<10x256xf32> to vector<1x256xf32>
    %65 = vector.broadcast %63 : vector<10x1xf32> to vector<10x256xf32>
    %66 = vector.broadcast %64 : vector<1x256xf32> to vector<10x256xf32>
    %67 = arith.mulf %65, %66 : vector<10x256xf32>
    %68 = arith.addf %62, %67 : vector<10x256xf32>
    %69 = vector.extract_strided_slice %23 {offsets = [0, 7], sizes = [10, 1], strides = [1, 1]} : vector<10x10xf32> to vector<10x1xf32>
    %70 = vector.extract_strided_slice %22 {offsets = [7, 0], sizes = [1, 256], strides = [1, 1]} : vector<10x256xf32> to vector<1x256xf32>
    %71 = vector.broadcast %69 : vector<10x1xf32> to vector<10x256xf32>
    %72 = vector.broadcast %70 : vector<1x256xf32> to vector<10x256xf32>
    %73 = arith.mulf %71, %72 : vector<10x256xf32>
    %74 = arith.addf %68, %73 : vector<10x256xf32>
    %75 = vector.extract_strided_slice %23 {offsets = [0, 8], sizes = [10, 1], strides = [1, 1]} : vector<10x10xf32> to vector<10x1xf32>
    %76 = vector.extract_strided_slice %22 {offsets = [8, 0], sizes = [1, 256], strides = [1, 1]} : vector<10x256xf32> to vector<1x256xf32>
    %77 = vector.broadcast %75 : vector<10x1xf32> to vector<10x256xf32>
    %78 = vector.broadcast %76 : vector<1x256xf32> to vector<10x256xf32>
    %79 = arith.mulf %77, %78 : vector<10x256xf32>
    %80 = arith.addf %74, %79 : vector<10x256xf32>
    %81 = vector.extract_strided_slice %23 {offsets = [0, 9], sizes = [10, 1], strides = [1, 1]} : vector<10x10xf32> to vector<10x1xf32>
    %82 = vector.extract_strided_slice %22 {offsets = [9, 0], sizes = [1, 256], strides = [1, 1]} : vector<10x256xf32> to vector<1x256xf32>
    %83 = vector.broadcast %81 : vector<10x1xf32> to vector<10x256xf32>
    %84 = vector.broadcast %82 : vector<1x256xf32> to vector<10x256xf32>
    %85 = arith.mulf %83, %84 : vector<10x256xf32>
    %86 = arith.addf %80, %85 : vector<10x256xf32>
    %cst_10 = arith.constant 0.000000e+00 : f32
    %87 = vector.broadcast %cst_10 : f32 to vector<10x256xf32>
    %88 = arith.subf %87, %86 : vector<10x256xf32>
    %89 = math.exp %88 : vector<10x256xf32>
    %cst_11 = arith.constant 1.000000e+00 : f32
    %90 = vector.broadcast %cst_11 : f32 to vector<10x256xf32>
    %91 = arith.addf %90, %89 : vector<10x256xf32>
    %92 = tpu.reciprocal %91 {approx = true} : vector<10x256xf32> -> vector<10x256xf32>
    %c0_12 = arith.constant 0 : index
    %c0_13 = arith.constant 0 : index
    %93 = vector.load %arg6[%c0_12, %c0_13] : memref<1x10xf32, #tpu.memory_space<vmem>>, vector<1x10xf32>
    %c0_14 = arith.constant 0 : index
    %c0_15 = arith.constant 0 : index
    %94 = vector.load %arg7[%c0_14, %c0_15] : memref<1x1xf32, #tpu.memory_space<vmem>>, vector<1x1xf32>
    %95 = vector.shape_cast %94 : vector<1x1xf32> to vector<1x1xf32>
    %96 = vector.broadcast %95 : vector<1x1xf32> to vector<1x256xf32>
    %97 = vector.extract_strided_slice %93 {offsets = [0, 0], sizes = [1, 1], strides = [1, 1]} : vector<1x10xf32> to vector<1x1xf32>
    %98 = vector.extract_strided_slice %92 {offsets = [0, 0], sizes = [1, 256], strides = [1, 1]} : vector<10x256xf32> to vector<1x256xf32>
    %99 = vector.broadcast %97 : vector<1x1xf32> to vector<1x256xf32>
    %100 = arith.mulf %99, %98 : vector<1x256xf32>
    %101 = arith.addf %96, %100 : vector<1x256xf32>
    %102 = vector.extract_strided_slice %93 {offsets = [0, 1], sizes = [1, 1], strides = [1, 1]} : vector<1x10xf32> to vector<1x1xf32>
    %103 = vector.extract_strided_slice %92 {offsets = [1, 0], sizes = [1, 256], strides = [1, 1]} : vector<10x256xf32> to vector<1x256xf32>
    %104 = vector.broadcast %102 : vector<1x1xf32> to vector<1x256xf32>
    %105 = arith.mulf %104, %103 : vector<1x256xf32>
    %106 = arith.addf %101, %105 : vector<1x256xf32>
    %107 = vector.extract_strided_slice %93 {offsets = [0, 2], sizes = [1, 1], strides = [1, 1]} : vector<1x10xf32> to vector<1x1xf32>
    %108 = vector.extract_strided_slice %92 {offsets = [2, 0], sizes = [1, 256], strides = [1, 1]} : vector<10x256xf32> to vector<1x256xf32>
    %109 = vector.broadcast %107 : vector<1x1xf32> to vector<1x256xf32>
    %110 = arith.mulf %109, %108 : vector<1x256xf32>
    %111 = arith.addf %106, %110 : vector<1x256xf32>
    %112 = vector.extract_strided_slice %93 {offsets = [0, 3], sizes = [1, 1], strides = [1, 1]} : vector<1x10xf32> to vector<1x1xf32>
    %113 = vector.extract_strided_slice %92 {offsets = [3, 0], sizes = [1, 256], strides = [1, 1]} : vector<10x256xf32> to vector<1x256xf32>
    %114 = vector.broadcast %112 : vector<1x1xf32> to vector<1x256xf32>
    %115 = arith.mulf %114, %113 : vector<1x256xf32>
    %116 = arith.addf %111, %115 : vector<1x256xf32>
    %117 = vector.extract_strided_slice %93 {offsets = [0, 4], sizes = [1, 1], strides = [1, 1]} : vector<1x10xf32> to vector<1x1xf32>
    %118 = vector.extract_strided_slice %92 {offsets = [4, 0], sizes = [1, 256], strides = [1, 1]} : vector<10x256xf32> to vector<1x256xf32>
    %119 = vector.broadcast %117 : vector<1x1xf32> to vector<1x256xf32>
    %120 = arith.mulf %119, %118 : vector<1x256xf32>
    %121 = arith.addf %116, %120 : vector<1x256xf32>
    %122 = vector.extract_strided_slice %93 {offsets = [0, 5], sizes = [1, 1], strides = [1, 1]} : vector<1x10xf32> to vector<1x1xf32>
    %123 = vector.extract_strided_slice %92 {offsets = [5, 0], sizes = [1, 256], strides = [1, 1]} : vector<10x256xf32> to vector<1x256xf32>
    %124 = vector.broadcast %122 : vector<1x1xf32> to vector<1x256xf32>
    %125 = arith.mulf %124, %123 : vector<1x256xf32>
    %126 = arith.addf %121, %125 : vector<1x256xf32>
    %127 = vector.extract_strided_slice %93 {offsets = [0, 6], sizes = [1, 1], strides = [1, 1]} : vector<1x10xf32> to vector<1x1xf32>
    %128 = vector.extract_strided_slice %92 {offsets = [6, 0], sizes = [1, 256], strides = [1, 1]} : vector<10x256xf32> to vector<1x256xf32>
    %129 = vector.broadcast %127 : vector<1x1xf32> to vector<1x256xf32>
    %130 = arith.mulf %129, %128 : vector<1x256xf32>
    %131 = arith.addf %126, %130 : vector<1x256xf32>
    %132 = vector.extract_strided_slice %93 {offsets = [0, 7], sizes = [1, 1], strides = [1, 1]} : vector<1x10xf32> to vector<1x1xf32>
    %133 = vector.extract_strided_slice %92 {offsets = [7, 0], sizes = [1, 256], strides = [1, 1]} : vector<10x256xf32> to vector<1x256xf32>
    %134 = vector.broadcast %132 : vector<1x1xf32> to vector<1x256xf32>
    %135 = arith.mulf %134, %133 : vector<1x256xf32>
    %136 = arith.addf %131, %135 : vector<1x256xf32>
    %137 = vector.extract_strided_slice %93 {offsets = [0, 8], sizes = [1, 1], strides = [1, 1]} : vector<1x10xf32> to vector<1x1xf32>
    %138 = vector.extract_strided_slice %92 {offsets = [8, 0], sizes = [1, 256], strides = [1, 1]} : vector<10x256xf32> to vector<1x256xf32>
    %139 = vector.broadcast %137 : vector<1x1xf32> to vector<1x256xf32>
    %140 = arith.mulf %139, %138 : vector<1x256xf32>
    %141 = arith.addf %136, %140 : vector<1x256xf32>
    %142 = vector.extract_strided_slice %93 {offsets = [0, 9], sizes = [1, 1], strides = [1, 1]} : vector<1x10xf32> to vector<1x1xf32>
    %143 = vector.extract_strided_slice %92 {offsets = [9, 0], sizes = [1, 256], strides = [1, 1]} : vector<10x256xf32> to vector<1x256xf32>
    %144 = vector.broadcast %142 : vector<1x1xf32> to vector<1x256xf32>
    %145 = arith.mulf %144, %143 : vector<1x256xf32>
    %146 = arith.addf %141, %145 : vector<1x256xf32>
    %cst_16 = arith.constant 0.000000e+00 : f32
    %147 = vector.broadcast %cst_16 : f32 to vector<1x256xf32>
    %148 = arith.subf %147, %146 : vector<1x256xf32>
    %149 = math.exp %148 : vector<1x256xf32>
    %cst_17 = arith.constant 1.000000e+00 : f32
    %150 = vector.broadcast %cst_17 : f32 to vector<1x256xf32>
    %151 = arith.addf %150, %149 : vector<1x256xf32>
    %152 = tpu.reciprocal %151 {approx = true} : vector<1x256xf32> -> vector<1x256xf32>
    %c0_18 = arith.constant 0 : index
    %c0_19 = arith.constant 0 : index
    %153 = vector.load %arg8[%c0_18, %c0_19] : memref<1x256xf32, #tpu.memory_space<vmem>>, vector<1x256xf32>
    tpu.vector_store %arg8[%c0_18, %c0_19], %152 {strides = array<i32>} : memref<1x256xf32, #tpu.memory_space<vmem>>, vector<1x256xf32>,
    return
  }
  func.func @transform_0(%arg0: i32) -> (i32, i32) {
    %c0_i32 = arith.constant 0 : i32
    %c0_i32_0 = arith.constant 0 : i32
    return %c0_i32, %arg0 : i32, i32
  }
  func.func @transform_1(%arg0: i32) -> (i32, i32) {
    %c0_i32 = arith.constant 0 : i32
    %c0_i32_0 = arith.constant 0 : i32
    %c0_i32_1 = arith.constant 0 : i32
    return %c0_i32, %c0_i32_0 : i32, i32
  }
  func.func @transform_2(%arg0: i32) -> (i32, i32) {
    %c0_i32 = arith.constant 0 : i32
    %c0_i32_0 = arith.constant 0 : i32
    %c0_i32_1 = arith.constant 0 : i32
    return %c0_i32, %c0_i32_0 : i32, i32
  }
  func.func @transform_3(%arg0: i32) -> (i32, i32) {
    %c0_i32 = arith.constant 0 : i32
    %c0_i32_0 = arith.constant 0 : i32
    %c0_i32_1 = arith.constant 0 : i32
    return %c0_i32, %c0_i32_0 : i32, i32
  }
  func.func @transform_4(%arg0: i32) -> (i32, i32) {
    %c0_i32 = arith.constant 0 : i32
    %c0_i32_0 = arith.constant 0 : i32
    %c0_i32_1 = arith.constant 0 : i32
    return %c0_i32, %c0_i32_0 : i32, i32
  }
  func.func @transform_5(%arg0: i32) -> (i32, i32) {
    %c0_i32 = arith.constant 0 : i32
    %c0_i32_0 = arith.constant 0 : i32
    %c0_i32_1 = arith.constant 0 : i32
    return %c0_i32, %c0_i32_0 : i32, i32
  }
  func.func @transform_6(%arg0: i32) -> (i32, i32) {
    %c0_i32 = arith.constant 0 : i32
    %c0_i32_0 = arith.constant 0 : i32
    %c0_i32_1 = arith.constant 0 : i32
    return %c0_i32, %c0_i32_0 : i32, i32
  }
  func.func @transform_7(%arg0: i32) -> (i32, i32) {
    %c0_i32 = arith.constant 0 : i32
    %c0_i32_0 = arith.constant 0 : i32
    return %c0_i32, %arg0 : i32, i32
  }
}

</mosaic_0001>

<bundles_post_ra>
// kernel: tpu_custom_call.1
= control target key start
LH: loop header
LB: loop body
LE: loop exit
PB: predicated region body
PF: predicated region fallthrough
CT: control target
= control target key end

     0   :  { %s1484_s0 = inlined_call_operand.vmem [shape: f32[2,512], index: 0, kind: input, shape index: {}]   ;;  %s1485_s1 = inlined_call_operand.vmem [shape: f32[10,2], index: 1, kind: input, shape index: {}]   ;;  %s1486_s2 = inlined_call_operand.vmem [shape: f32[10,1], index: 2, kind: input, shape index: {}]   ;;  %s1487_s3 = inlined_call_operand.vmem [shape: f32[10,10], index: 3, kind: input, shape index: {}]   ;;  %s1488_s4 = inlined_call_operand.vmem [shape: f32[10,1], index: 4, kind: input, shape index: {}]   ;;  %s1489_s5 = inlined_call_operand.vmem [shape: f32[1,10], index: 5, kind: input, shape index: {}]   ;;  %s1490_s6 = inlined_call_operand.<no memory space> [shape: f32[1,1], index: 6, kind: input, shape index: {}]   ;;  %s1491_s7 = inlined_call_operand.hbm [shape: f32[1,512], index: 7, kind: output, shape index: {}]  }
   0x1   :  { %v12_v0 = vstv %s1490_s6 }
   0x2   :  { %13 = vst [vmem:[#allocation2] sm:$0x1] %v12_v0 }
   0x3   :  { %14 = vsyncpa [#allocation4], 0 }
   0x4   :  { %16 = vsyncpa [#allocation4 + $0x1], 0  ;;  %s1208_s26 = smov 0   ;;  %s1210_s27 = smov 0  }
   0x5   :  { %s1212_s28 = smov 0   ;;  %s1214_s29 = smov 0  }
   0x6 LB: > { %s1229_s6 = sadd.s32 4294967295, %s1151_s29   ;;  %s951_s30 = sadd.s32 4294967294, %s1151_s29   ;;  %s1151_s29 = sphi %s1214_s29, %s1497_s29   ;;  %s1147_s28 = sphi %s1212_s28, %s1496_s28   ;;  %s1143_s27 = sphi %s1210_s27, %s1495_s27   ;;  %s1139_s26 = sphi %s1208_s26, %s1494_s26  }
   0x7   : > { %s1233_s8 = sadd.s32 1, %s1151_s29   ;;  %s181_s9 = sadd.s32 1, %s1147_s28 }
   0x8   : > { %s178_s10 = ssub.s32 %s1151_s29, %s1233_s8  ;;  %p191_p0 = scmp.ne.s32.totalorder %s1147_s28, %s1143_s27 }
   0x9   : > { %p179_p1 = scmp.eq.s32.totalorder %s178_s10, 0  ;;  %p192_p2 = scmp.eq.s32.totalorder %s1229_s6, 1 }
   0xa   : > { %p197_p3 = scmp.ne.s32.totalorder %s1143_s27, %s1139_s26  ;;  %p198_p4 = scmp.eq.s32.totalorder %s951_s30, 1 }
   0xb   : > { %s1244_s11 = scalar_select %p179_p1, %s1147_s28, %s181_s9  }
   0xc   : > { %p1246_p5 = por %p192_p2, %p191_p0  ;;  %p1250_p6 = por %p198_p4, %p197_p3 }
   0xd   : > { %p954_p7 = scmp.ge.s32.totalorder %s1151_s29, 1  ;;  %p243_p8 = scmp.lt.s32.totalorder %s1151_s29, 3 }
   0xf   : > { %p244_p9 = pnand %p954_p7, %p243_p8 }
  0x10   : > { %v283_v1 = vld [vmem:[%s1485_s1] sm:$0xff] (!%p244_p9)  ;;  %v1153_v2 = vmov (!%p244_p9), 1   ;;  %v1154_v3 = vmov (!%p244_p9), 0   ;;  %v284_v5 = vld [vmem:[%s1485_s1 + $0x8] sm:$0x3] (!%p244_p9)  ;;  %v1155_v9 = vmov (!%p244_p9), 2   ;;  %v308_v21 = vlaneseq (!%p244_p9) }
  0x11   : > { %247 = sbr.rel (%p244_p9) target bundleno = 317 (0x13d), region = 48  ;;  %1015 = vset.pattern.permute.xlu1 (!%p244_p9), %v1153_v2  ;;  %1014 = vset.pattern.permute.xlu0 (!%p244_p9), %v1154_v3  ;;  %v285_v4 = vld [vmem:[%s1486_s2] sm:$0xff] (!%p244_p9)  ;;  %v286_v6 = vld [vmem:[%s1486_s2 + $0x8] sm:$0x3] (!%p244_p9)  ;;  %v1156_v10 = vmov (!%p244_p9), 4   ;;  %v1157_v11 = vmov (!%p244_p9), 3  }
  0x12   : > { %335 = vperm.xlu1 (!%p244_p9), %1015, %v283_v1   ;;  %299 = vperm.xlu0 (!%p244_p9), %1014, %v283_v1   ;;  %v388_v7 = vld [vmem:[%s1487_s3] sm:$0xff] (!%p244_p9)  ;;  %v1158_v12 = vmov (!%p244_p9), 7   ;;  %v1159_v13 = vmov (!%p244_p9), 5   ;;  %v391_v14 = vld [vmem:[%s1488_s4 + $0x8] sm:$0x3] (!%p244_p9)  ;;  %v1160_v15 = vmov (!%p244_p9), 6  }
  0x13   : > { %v390_v8 = vld [vmem:[%s1488_s4] sm:$0xff] (!%p244_p9)  ;;  %v389_v16 = vld [vmem:[%s1487_s3 + $0x8] sm:$0x3] (!%p244_p9)  ;;  %v1161_v17 = vmov (!%p244_p9), 8   ;;  %v1162_v19 = vmov (!%p244_p9), 9   ;;  %s956_s17 = sshll.u32 (!%p244_p9), %s1229_s6, 1 }
  0x14   : > { %v664_v18 = vld [vmem:[%s1489_s5] sm:$0x1] (!%p244_p9)  ;;  %p276_p10 = scmp.lt.s32.totalorder (!%p244_p9), %s956_s17, 3  ;;  %v1291_v22 = vshrl.u32 (!%p244_p9), %v308_v21, 7  ;;  %s272_s22 = sand.u32 (!%p244_p9), 1, %s1143_s27   ;;  %vm874_vm0 = vcmp.lt.s32.totalorder (!%p244_p9), %v308_v21, 256 }
  0x15   : > { %v665_v20 = vld [vmem:[#allocation2] sm:$0x1] (!%p244_p9)  ;;  %s955_s23 = sshll.u32 (!%p244_p9), %s272_s22, 1  ;;  %s963_s24 = sshll.u32 (!%p244_p9), %s1229_s6, 5 }
  0x16   : > { %1016 = vset.pattern.permute.xlu1 (!%p244_p9), %v1154_v3  ;;  %289 = vperm.xlu0 (!%p244_p9), %1014, %v285_v4   ;;  %v1297_v23 = vsub.s32 (!%p244_p9), 0, %v1291_v22  ;;  %v1300_v24 = vsub.s32 (!%p244_p9), 2, %v1291_v22  ;;  %v1303_v26 = vsub.s32 (!%p244_p9), 1, %v1291_v22  ;;  %v1306_v27 = vsub.s32 (!%p244_p9), 3, %v1291_v22  ;;  %s274_s25 = scalar_lea.vmem (!%p244_p9), [#allocation3], %s955_s23  ;;  %s1442_s14 = scalar_lea.hbm (!%p244_p9), %s1491_s7, %s963_s24 }
  0x17   : > { %304 = vperm.xlu1 (!%p244_p9), %1016, %v284_v5   ;;  %s892_s30 = sshll.u32 (!%p244_p9), %s274_s25, 4  ;;  %s878_s15 = scalar_lea.sflag (!%p244_p9), [#allocation4], %s272_s22  ;;  %s1444_s30 = int_to_ptr.vmem [resolvable:$true] %s892_s30 }
  0x18   : > { %s1499_s17 = smov (!%p276_p10, %s956_s17), 3  ;;  %s1089_s16 = scalar_lea.vmem %s1444_s30, 32 }
  0x19   : > { %s957_s18 = sshll.u32 %s1499_s17, 1  ;;  %p1090_p11 = scmp.ne.s32.totalorder %s1444_s30, %s1089_s16 }
  0x1a   : > { %294 = vperm.xlu0 %1014, %v286_v6   ;;  %s279_s21 = scalar_lea.vmem %s1484_s0, %s957_s18  ;;  %s1164_s6 = smov [#allocation3]  }
  0x1b   : > { %1017 = vset.pattern.permute.xlu1 %v1153_v2  ;;  %v282_v25 = vld [vmem:[%s279_s21] sm:$0xf]  ;;  %p1091_p12 = pnand %p1090_p11, %p1246_p5  ;;  %s1093_s17 = sshll.u32 %s1164_s6, 4  ;;  %s1094_s17 = int_to_ptr.vmem [resolvable:$false] %s1093_s17 }
  0x1c   : > { %339 = vperm.xlu1 %1017, %v284_v5   ;;  %v311_v28 = vrot.slane %v282_v25, %v1297_v23  ;;  %v315_v29 = vrot.slane %v282_v25, %v1300_v24  ;;  %v345_v30 = vrot.slane %v282_v25, %v1303_v26  ;;  %v349_v31 = vrot.slane %v282_v25, %v1306_v27  ;;  %s1095_s18 = scalar_lea.vmem %s1094_s17, 64  ;;  %p1096_p0 = scmp.lt.s32.totalorder %s1444_s30, %s1094_s17 }
  0x1d   : > { %p1092_p13 = pneg %p1091_p12  ;;  %p1097_p1 = scmp.lt.s32.totalorder %s1095_s18, %s1089_s16 }
  0x1e   : > { %404 = vperm.xlu0 %1014, %v388_v7   ;;  %v321_v32 = vrot.slane %v311_v28, %v1297_v23  ;;  %v325_v33 = vrot.slane %v315_v29, %v1297_v23  ;;  %v355_v36 = vrot.slane %v345_v30, %v1303_v26  ;;  %v359_v37 = vrot.slane %v349_v31, %v1303_v26 }
  0x1f   : > { %v510_v31 = vsub.s32 4, %v1291_v22  ;;  %p1098_p2 = por %p1097_p1, %p1096_p0 }
  0x20   : > { %1018 = vset.pattern.permute.xlu1 %v1154_v3 }
  0x21   : > { %394 = vperm.xlu1 %1018, %v390_v8   ;;  %p1099_p3 = pnand %p1098_p2, %p1092_p13 }
  0x22   : > { %1019 = vset.pattern.permute.xlu0 %v1153_v2 }
  0x23   : > { %429 = vperm.xlu0 %1019, %v388_v7  }
  0x25   : > { %1020 = vset.pattern.permute.xlu1 %v1155_v9 }
  0x26   : > { %453 = vperm.xlu1 %1020, %v388_v7  }
  0x27   : > { %1022 = vset.pattern.permute.xlu0 %v1156_v10 }
  0x28   : > { %501 = vperm.xlu0 %1022, %v388_v7  }
  0x2a   : > { %1021 = vset.pattern.permute.xlu1 %v1157_v11 }
  0x2b   : > { %477 = vperm.xlu1 %1021, %v388_v7  }
  0x2c   : > { %1025 = vset.pattern.permute.xlu0 %v1158_v12 }
  0x2d   : > { %573 = vperm.xlu0 %1025, %v388_v7  }
  0x2f   : > { %1023 = vset.pattern.permute.xlu1 %v1159_v13 }
  0x30   : > { %525 = vperm.xlu1 %1023, %v388_v7  }
  0x31   : > { %1028 = vset.pattern.permute.xlu0 %v1154_v3 }
  0x32   : > { %399 = vperm.xlu0 %1028, %v391_v14  }
  0x34   : > { %1024 = vset.pattern.permute.xlu1 %v1160_v15 }
  0x35   : > { %549 = vperm.xlu1 %1024, %v388_v7  }
  0x36   : > { %1031 = vset.pattern.permute.xlu0 %v1155_v9 }
  0x37   : > { %457 = vperm.xlu0 %1031, %v389_v16  }
  0x39   : > { %1026 = vset.pattern.permute.xlu1 %v1154_v3 }
  0x3a   : > { %409 = vperm.xlu1 %1026, %v389_v16  }
  0x3b   : > { %1034 = vset.pattern.permute.xlu0 %v1159_v13 }
  0x3c   : > { %529 = vperm.xlu0 %1034, %v389_v16  }
  0x3e   : > { %1027 = vset.pattern.permute.xlu1 %v1161_v17 }
  0x3f   : > { %597 = vperm.xlu1 %1027, %v388_v7  }
  0x40   : > { %1037 = vset.pattern.permute.xlu0 %v1161_v17 }
  0x41   : > { %601 = vperm.xlu0 %1037, %v389_v16  }
  0x43   : > { %1029 = vset.pattern.permute.xlu1 %v1153_v2 }
  0x44   : > { %433 = vperm.xlu1 %1029, %v389_v16  }
  0x45   : > { %1040 = vset.pattern.permute.xlu0 %v1153_v2 }
  0x46   : > { %689 = vperm.xlu0 %1040, %v664_v18  }
  0x48   : > { %1030 = vset.pattern.permute.xlu1 %v1162_v19 }
  0x49   : > { %621 = vperm.xlu1 %1030, %v388_v7  }
  0x4a   : > { %1042 = vset.pattern.permute.xlu0 %v1157_v11 }
  0x4b   : > { %725 = vperm.xlu0 %1042, %v664_v18  }
  0x4d   : > { %1032 = vset.pattern.permute.xlu1 %v1157_v11 }
  0x4e   : > { %481 = vperm.xlu1 %1032, %v389_v16  }
  0x4f   : > { %1045 = vset.pattern.permute.xlu0 %v1160_v15 }
  0x50   : > { %779 = vperm.xlu0 %1045, %v664_v18  }
  0x52   : > { %1033 = vset.pattern.permute.xlu1 %v1156_v10 }
  0x53   : > { %505 = vperm.xlu1 %1033, %v389_v16  }
  0x54   : > { %1048 = vset.pattern.permute.xlu0 %v1162_v19 }
  0x55   : > { %827 = vperm.xlu0 %1048, %v664_v18  }
  0x57   : > { %1035 = vset.pattern.permute.xlu1 %v1160_v15 }
  0x58   : > { %553 = vperm.xlu1 %1035, %v389_v16  }
  0x5c   : > { %1036 = vset.pattern.permute.xlu1 %v1158_v12 }
  0x5d   : > { %577 = vperm.xlu1 %1036, %v389_v16  }
  0x61   : > { %1038 = vset.pattern.permute.xlu1 %v1162_v19 }
  0x62   : > { %625 = vperm.xlu1 %1038, %v389_v16  }
  0x66   : > { %1039 = vset.pattern.permute.xlu1 %v1154_v3 }
  0x67   : > { %677 = vperm.xlu1 %1039, %v664_v18  }
  0x6b   : > { %668 = vperm.xlu1 %1039, %v665_v20  }
  0x6f   : > { %1041 = vset.pattern.permute.xlu1 %v1155_v9 }
  0x70   : > { %707 = vperm.xlu1 %1041, %v664_v18  }
  0x74   : > { %1043 = vset.pattern.permute.xlu1 %v1156_v10 }
  0x75   : > { %743 = vperm.xlu1 %1043, %v664_v18  }
  0x79   : > { %1044 = vset.pattern.permute.xlu1 %v1159_v13 }
  0x7a   : > { %761 = vperm.xlu1 %1044, %v664_v18  }
  0x7e   : > { %1046 = vset.pattern.permute.xlu1 %v1158_v12 }
  0x7f   : > { %797 = vperm.xlu1 %1046, %v664_v18  }
  0x83   : > { %1047 = vset.pattern.permute.xlu1 %v1161_v17 }
  0x84   : > { %815 = vperm.xlu1 %1047, %v664_v18  }
  0x91   : > { %v336_v34 = vpop.permute.xlu1 %335  ;;  %v300_v35 = vpop.permute.xlu0 %299 }
  0x92   : > { %v326_v38 = vmul.f32 %v321_v32, %v300_v35  ;;  %v327_v39 = vmul.f32 %v325_v33, %v300_v35  ;;  %v360_v41 = vmul.f32 %v355_v36, %v336_v34  ;;  %v361_v42 = vmul.f32 %v359_v37, %v336_v34 }
  0x95   : > { %v290_v40 = vpop.permute.xlu0 %289 }
  0x96   : > { %v330_v43 = vadd.f32 %v326_v38, %v290_v40  ;;  %v331_v44 = vadd.f32 %v327_v39, %v290_v40  ;;  %v305_v45 = vpop.permute.xlu1 %304  ;;  %v534_v39 = vsub.s32 5, %v1291_v22 }
  0x97   : > { %v328_v46 = vmul.f32 %v321_v32, %v305_v45  ;;  %v329_v47 = vmul.f32 %v325_v33, %v305_v45  ;;  %v558_v45 = vsub.s32 6, %v1291_v22 }
  0x98   : > { %v364_v48 = vadd.f32 %v360_v41, %v330_v43  ;;  %v365_v49 = vadd.f32 %v361_v42, %v331_v44 }
  0x99   : > { %v295_v50 = vpop.permute.xlu0 %294 }
  0x9a   : > { %v368_v51 = vsub.f32 0.0, %v364_v48  ;;  %v369_v52 = vsub.f32 0.0, %v365_v49  ;;  %v332_v53 = vadd.f32 %v328_v46, %v295_v50  ;;  %v333_v54 = vadd.f32 %v329_v47, %v295_v50 }
  0x9b   : > { %v340_v55 = vpop.permute.xlu1 %339 }
  0x9c   : > { %v372_v56 = vmul.f32 1.442695, %v368_v51  ;;  %v374_v57 = vmul.f32 1.442695, %v369_v52  ;;  %v362_v58 = vmul.f32 %v355_v36, %v340_v55  ;;  %v363_v59 = vmul.f32 %v359_v37, %v340_v55 }
  0x9d   : > { %v405_v10 = vpop.permute.xlu0 %404 }
  0x9e   : > { %1049 = vpow2.f32 %v372_v56  ;;  %v366_v60 = vadd.f32 %v362_v58, %v332_v53  ;;  %v367_v61 = vadd.f32 %v363_v59, %v333_v54 }
  0x9f   : > { %1051 = vpow2.f32 %v374_v57 }
  0xa0   : > { %v370_v62 = vsub.f32 0.0, %v366_v60  ;;  %v371_v63 = vsub.f32 0.0, %v367_v61  ;;  %v395_v0 = vpop.permute.xlu1 %394 }
  0xa2   : > { %v376_v1 = vmul.f32 1.442695, %v370_v62  ;;  %v378_v2 = vmul.f32 1.442695, %v371_v63  ;;  %v430_v15 = vpop.permute.xlu0 %429 }
  0xa4   : > { %1053 = vpow2.f32 %v376_v1 }
  0xa5   : > { %v454_v3 = vpop.permute.xlu1 %453  ;;  %1055 = vpow2.f32 %v378_v2 }
  0xa7   : > { %v502_v34 = vpop.permute.xlu0 %501 }
  0xa8   : > { %v1050_v4 = vpop.eup %1049 }
  0xa9   : > { %v1052_v5 = vpop.eup %1051  ;;  %v380_v6 = vadd.f32 1.0, %v1050_v4 }
  0xaa   : > { %v381_v7 = vadd.f32 1.0, %v1052_v5  ;;  %v478_v8 = vpop.permute.xlu1 %477 }
  0xab   : > { %1057 = vrcp.f32 %v380_v6 }
  0xac   : > { %1059 = vrcp.f32 %v381_v7  ;;  %v574_v56 = vpop.permute.xlu0 %573 }
  0xae   : > { %v1054_v9 = vpop.eup %1053 }
  0xaf   : > { %v526_v11 = vpop.permute.xlu1 %525  ;;  %v1056_v12 = vpop.eup %1055  ;;  %v382_v13 = vadd.f32 1.0, %v1054_v9 }
  0xb0   : > { %v383_v14 = vadd.f32 1.0, %v1056_v12 }
  0xb1   : > { %1061 = vrcp.f32 %v382_v13 }
  0xb2   : > { %1063 = vrcp.f32 %v383_v14  ;;  %v400_v14 = vpop.permute.xlu0 %399 }
  0xb4   : > { %v550_v16 = vpop.permute.xlu1 %549 }
  0xb5   : > { %v1058_v17 = vpop.eup %1057 }
  0xb6   : > { %v1060_v18 = vpop.eup %1059  ;;  %v415_v19 = vrot.slane %v1058_v17, %v1297_v23  ;;  %v1318_v20 = vrot.slane %v1058_v17, %v1303_v26  ;;  %v1325_v30 = vrot.slane %v1058_v17, %v1300_v24  ;;  %v1333_v38 = vrot.slane %v1058_v17, %v1306_v27 }
  0xb7   : > { %v419_v25 = vrot.slane %v1060_v18, %v1297_v23  ;;  %v1322_v28 = vrot.slane %v1060_v18, %v1303_v26  ;;  %v1329_v33 = vrot.slane %v1060_v18, %v1300_v24  ;;  %v1338_v42 = vrot.slane %v1060_v18, %v1306_v27 }
  0xb8   : > { %v420_v29 = vmul.f32 %v415_v19, %v405_v10  ;;  %v444_v37 = vmul.f32 %v1318_v20, %v430_v15  ;;  %v468_v43 = vmul.f32 %v1325_v30, %v454_v3  ;;  %v1341_v44 = vrot.slane %v1058_v17, %v510_v31 }
  0xb9   : > { %v421_v32 = vmul.f32 %v419_v25, %v405_v10  ;;  %v410_v35 = vpop.permute.xlu1 %409  ;;  %v445_v41 = vmul.f32 %v1322_v28, %v430_v15  ;;  %v469_v46 = vmul.f32 %v1329_v33, %v454_v3  ;;  %v1345_v48 = vrot.slane %v1060_v18, %v510_v31 }
  0xba   : > { %v424_v36 = vadd.f32 %v420_v29, %v395_v0  ;;  %v492_v50 = vmul.f32 %v1333_v38, %v478_v8  ;;  %v1348_v51 = vrot.slane %v1058_v17, %v534_v39  ;;  %v582_v27 = vsub.s32 7, %v1291_v22 }
  0xbb   : > { %v425_v40 = vadd.f32 %v421_v32, %v395_v0  ;;  %v493_v54 = vmul.f32 %v1338_v42, %v478_v8  ;;  %v1352_v55 = vrot.slane %v1060_v18, %v534_v39  ;;  %v1062_v57 = vpop.eup %1061  ;;  %v516_v59 = vmul.f32 %v1341_v44, %v502_v34 }
  0xbc   : > { %v448_v24 = vadd.f32 %v444_v37, %v424_v36  ;;  %v1355_v60 = vrot.slane %v1058_v17, %v558_v45  ;;  %v1064_v61 = vpop.eup %1063  ;;  %v517_v63 = vmul.f32 %v1345_v48, %v502_v34  ;;  %v1358_v0 = vrot.slane %v1060_v18, %v558_v45 }
  0xbd   : > { %v449_v47 = vadd.f32 %v445_v41, %v425_v40  ;;  %v540_v2 = vmul.f32 %v1348_v51, %v526_v11  ;;  %v1361_v3 = vrot.slane %v1058_v17, %v582_v27  ;;  %v1363_v4 = vrot.slane %v1060_v18, %v582_v27 }
  0xbe   : > { %v472_v49 = vadd.f32 %v468_v43, %v448_v24  ;;  %v598_v52 = vpop.permute.xlu1 %597  ;;  %v541_v6 = vmul.f32 %v1352_v55, %v526_v11  ;;  %v564_v9 = vmul.f32 %v1355_v60, %v550_v16  ;;  %v1368_v10 = vrot.slane %v1062_v57, %v1297_v23 }
  0xbf   : > { %v473_v53 = vadd.f32 %v469_v46, %v449_v47  ;;  %v1371_v12 = vrot.slane %v1064_v61, %v1297_v23  ;;  %v565_v15 = vmul.f32 %v1358_v0, %v550_v16  ;;  %v588_v17 = vmul.f32 %v1361_v3, %v574_v56  ;;  %v458_v46 = vpop.permute.xlu0 %457 }
  0xc0   : > { %v496_v58 = vadd.f32 %v492_v50, %v472_v49  ;;  %v589_v18 = vmul.f32 %v1363_v4, %v574_v56  ;;  %v422_v11 = vmul.f32 %v415_v19, %v410_v35  ;;  %v423_v32 = vmul.f32 %v419_v25, %v410_v35 }
  0xc1   : > { %v497_v62 = vadd.f32 %v493_v54, %v473_v53  ;;  %v1377_v34 = vrot.slane %v1062_v57, %v1303_v26  ;;  %v1380_v36 = vrot.slane %v1064_v61, %v1303_v26  ;;  %v612_v39 = vmul.f32 %v1368_v10, %v598_v52 }
  0xc2   : > { %v520_v1 = vadd.f32 %v516_v59, %v496_v58  ;;  %v613_v40 = vmul.f32 %v1371_v12, %v598_v52  ;;  %v426_v35 = vadd.f32 %v422_v11, %v400_v14  ;;  %v427_v26 = vadd.f32 %v423_v32, %v400_v14 }
  0xc3   : > { %v521_v5 = vadd.f32 %v517_v63, %v497_v62  ;;  %v434_v7 = vpop.permute.xlu1 %433 }
  0xc4   : > { %v544_v8 = vadd.f32 %v540_v2, %v520_v1  ;;  %v446_v16 = vmul.f32 %v1318_v20, %v434_v7  ;;  %v447_v24 = vmul.f32 %v1322_v28, %v434_v7  ;;  %v470_v20 = vmul.f32 %v1325_v30, %v458_v46 }
  0xc5   : > { %v545_v13 = vadd.f32 %v541_v6, %v521_v5  ;;  %v471_v28 = vmul.f32 %v1329_v33, %v458_v46  ;;  %v530_v5 = vpop.permute.xlu0 %529 }
  0xc6   : > { %v568_v29 = vadd.f32 %v564_v9, %v544_v8  ;;  %v450_v49 = vadd.f32 %v446_v16, %v426_v35  ;;  %v451_v27 = vadd.f32 %v447_v24, %v427_v26  ;;  %v542_v33 = vmul.f32 %v1348_v51, %v530_v5 }
  0xc7   : > { %v569_v31 = vadd.f32 %v565_v15, %v545_v13 }
  0xc8   : > { %v592_v37 = vadd.f32 %v588_v17, %v568_v29  ;;  %v622_v41 = vpop.permute.xlu1 %621  ;;  %v474_v61 = vadd.f32 %v470_v20, %v450_v49  ;;  %v475_v63 = vadd.f32 %v471_v28, %v451_v27 }
  0xc9   : > { %v593_v43 = vadd.f32 %v589_v18, %v569_v31  ;;  %v636_v19 = vmul.f32 %v1377_v34, %v622_v41  ;;  %v637_v25 = vmul.f32 %v1380_v36, %v622_v41  ;;  %v602_v18 = vpop.permute.xlu0 %601 }
  0xca   : > { %v616_v45 = vadd.f32 %v612_v39, %v592_v37 }
  0xcb   : > { %v617_v47 = vadd.f32 %v613_v40, %v593_v43  ;;  %v615_v40 = vmul.f32 %v1371_v12, %v602_v18 }
  0xcc   : > { %v640_v50 = vadd.f32 %v636_v19, %v616_v45 }
  0xcd   : > { %v641_v53 = vadd.f32 %v637_v25, %v617_v47  ;;  %v482_v52 = vpop.permute.xlu1 %481  ;;  %v690_v35 = vpop.permute.xlu0 %689 }
  0xce   : > { %v644_v54 = vsub.f32 0.0, %v640_v50  ;;  %v494_v56 = vmul.f32 %v1333_v38, %v482_v52  ;;  %v495_v58 = vmul.f32 %v1338_v42, %v482_v52  ;;  %v543_v42 = vmul.f32 %v1352_v55, %v530_v5 }
  0xcf   : > { %v645_v57 = vsub.f32 0.0, %v641_v53  ;;  %v614_v55 = vmul.f32 %v1368_v10, %v602_v18  ;;  %v695_v46 = vrot.slane %v690_v35, %v1297_v23 }
  0xd0   : > { %v648_v59 = vmul.f32 1.442695, %v644_v54  ;;  %v498_v1 = vadd.f32 %v494_v56, %v474_v61  ;;  %v499_v6 = vadd.f32 %v495_v58, %v475_v63 }
  0xd1   : > { %v650_v62 = vmul.f32 1.442695, %v645_v57  ;;  %v726_v54 = vpop.permute.xlu0 %725 }
  0xd2   : > { %1065 = vpow2.f32 %v648_v59  ;;  %v506_v2 = vpop.permute.xlu1 %505  ;;  %v731_v28 = vrot.slane %v726_v54, %v1297_v23 }
  0xd3   : > { %1067 = vpow2.f32 %v650_v62  ;;  %v518_v30 = vmul.f32 %v1341_v44, %v506_v2  ;;  %v519_v7 = vmul.f32 %v1345_v48, %v506_v2 }
  0xd5   : > { %v522_v38 = vadd.f32 %v518_v30, %v498_v1  ;;  %v523_v8 = vadd.f32 %v519_v7, %v499_v6 }
  0xd7   : > { %v554_v9 = vpop.permute.xlu1 %553  ;;  %v546_v13 = vadd.f32 %v542_v33, %v522_v38  ;;  %v547_v15 = vadd.f32 %v543_v42, %v523_v8 }
  0xd8   : > { %v566_v14 = vmul.f32 %v1355_v60, %v554_v9  ;;  %v567_v17 = vmul.f32 %v1358_v0, %v554_v9 }
  0xda   : > { %v570_v11 = vadd.f32 %v566_v14, %v546_v13  ;;  %v571_v48 = vadd.f32 %v567_v17, %v547_v15  ;;  %v780_v13 = vpop.permute.xlu0 %779 }
  0xdc   : > { %v1066_v29 = vpop.eup %1065  ;;  %v578_v31 = vpop.permute.xlu1 %577 }
  0xdd   : > { %v1068_v44 = vpop.eup %1067  ;;  %v656_v32 = vadd.f32 1.0, %v1066_v29  ;;  %v590_v37 = vmul.f32 %v1361_v3, %v578_v31  ;;  %v591_v51 = vmul.f32 %v1363_v4, %v578_v31 }
  0xde   : > { %v657_v39 = vadd.f32 1.0, %v1068_v44 }
  0xdf   : > { %1069 = vrcp.f32 %v656_v32  ;;  %v594_v60 = vadd.f32 %v590_v37, %v570_v11  ;;  %v595_v16 = vadd.f32 %v591_v51, %v571_v48  ;;  %v785_v32 = vrot.slane %v780_v13, %v1297_v23 }
  0xe0   : > { %1071 = vrcp.f32 %v657_v39  ;;  %v1163_v13 = vmov 1966171168  }
  0xe1   : > { %v626_v0 = vpop.permute.xlu1 %625  ;;  %v618_v41 = vadd.f32 %v614_v55, %v594_v60  ;;  %v619_v43 = vadd.f32 %v615_v40, %v595_v16 }
  0xe2   : > { %v638_v24 = vmul.f32 %v1377_v34, %v626_v0  ;;  %v639_v19 = vmul.f32 %v1380_v36, %v626_v0 }
  0xe4   : > { %v642_v25 = vadd.f32 %v638_v24, %v618_v41  ;;  %v643_v3 = vadd.f32 %v639_v19, %v619_v43  ;;  %v828_v43 = vpop.permute.xlu0 %827 }
  0xe6   : > { %v646_v4 = vsub.f32 0.0, %v642_v25  ;;  %v647_v45 = vsub.f32 0.0, %v643_v3  ;;  %v678_v10 = vpop.permute.xlu1 %677 }
  0xe7   : > { %v683_v47 = vrot.slane %v678_v10, %v1297_v23 }
  0xe8   : > { %v652_v12 = vmul.f32 1.442695, %v646_v4  ;;  %v654_v26 = vmul.f32 1.442695, %v647_v45  ;;  %v833_v45 = vrot.slane %v828_v43, %v1297_v23 }
  0xe9   : > { %v1406_v49 = vpop.eup %1069 }
  0xea   : > { %v1408_v50 = vpop.eup %1071  ;;  %1073 = vpow2.f32 %v652_v12  ;;  %v669_v34 = vpop.permute.xlu1 %668  ;;  %v696_v36 = vmul.f32 %v1406_v49, %v695_v46  ;;  %v684_v53 = vmul.f32 %v1406_v49, %v683_v47  ;;  %v732_v2 = vmul.f32 %v1406_v49, %v731_v28 }
  0xeb   : > { %1075 = vpow2.f32 %v654_v26  ;;  %v697_v27 = vmul.f32 %v1408_v50, %v695_v46  ;;  %v685_v52 = vmul.f32 %v1408_v50, %v683_v47  ;;  %v674_v20 = vrot.slane %v669_v34, %v1297_v23 }
  0xec   : > { %v700_v56 = vrot.slane %v696_v36, 1  ;;  %v733_v5 = vmul.f32 %v1408_v50, %v731_v28  ;;  %v736_v29 = vrot.slane %v732_v2, 3  ;;  %v786_v60 = vmul.f32 %v1406_v49, %v785_v32 }
  0xed   : > { %v701_v58 = vrot.slane %v697_v27, 1  ;;  %v686_v59 = vadd.f32 %v684_v53, %v674_v20  ;;  %v687_v61 = vadd.f32 %v685_v52, %v674_v20  ;;  %v787_v16 = vmul.f32 %v1408_v50, %v785_v32 }
  0xee   : > { %v737_v44 = vrot.slane %v733_v5, 3  ;;  %v790_v10 = vrot.slane %v786_v60, 6 }
  0xef   : > { %v708_v57 = vpop.permute.xlu1 %707  ;;  %v704_v30 = vadd.f32 %v700_v56, %v686_v59  ;;  %v705_v7 = vadd.f32 %v701_v58, %v687_v61  ;;  %v791_v46 = vrot.slane %v787_v16, 6 }
  0xf0   : > { %v713_v62 = vrot.slane %v708_v57, %v1297_v23 }
  0xf2   : > { %v714_v63 = vmul.f32 %v1406_v49, %v713_v62  ;;  %v715_v1 = vmul.f32 %v1408_v50, %v713_v62 }
  0xf4   : > { %v1074_v6 = vpop.eup %1073  ;;  %v718_v38 = vrot.slane %v714_v63, 2  ;;  %v719_v8 = vrot.slane %v715_v1, 2  ;;  %v744_v33 = vpop.permute.xlu1 %743 }
  0xf5   : > { %v1076_v42 = vpop.eup %1075  ;;  %v658_v9 = vadd.f32 1.0, %v1074_v6  ;;  %v749_v14 = vrot.slane %v744_v33, %v1297_v23 }
  0xf6   : > { %v659_v15 = vadd.f32 1.0, %v1076_v42  ;;  %v722_v17 = vadd.f32 %v718_v38, %v704_v30  ;;  %v723_v18 = vadd.f32 %v719_v8, %v705_v7 }
  0xf7   : > { %1077 = vrcp.f32 %v658_v9  ;;  %v750_v11 = vmul.f32 %v1406_v49, %v749_v14  ;;  %v751_v31 = vmul.f32 %v1408_v50, %v749_v14  ;;  %v858_v14 = vunpack.c.l.s4 %v1163_v13 }
  0xf8   : > { %1079 = vrcp.f32 %v659_v15  ;;  %v740_v48 = vadd.f32 %v736_v29, %v722_v17  ;;  %v741_v51 = vadd.f32 %v737_v44, %v723_v18 }
  0xf9   : > { %v762_v37 = vpop.permute.xlu1 %761  ;;  %v754_v55 = vrot.slane %v750_v11, 4  ;;  %v755_v39 = vrot.slane %v751_v31, 4  ;;  %v859_v15 = vunpack.c.0.s8 %v858_v14 }
  0xfa   : > { %v767_v40 = vrot.slane %v762_v37, %v1297_v23 }
  0xfb   : > { %v758_v24 = vadd.f32 %v754_v55, %v740_v48  ;;  %v759_v19 = vadd.f32 %v755_v39, %v741_v51  ;;  %v862_v18 = vsub.s32 %v859_v15, %v1291_v22 }
  0xfc   : > { %v768_v0 = vmul.f32 %v1406_v49, %v767_v40  ;;  %v769_v41 = vmul.f32 %v1408_v50, %v767_v40 }
  0xfe   : > { %v772_v25 = vrot.slane %v768_v0, 5  ;;  %v773_v3 = vrot.slane %v769_v41, 5  ;;  %v798_v35 = vpop.permute.xlu1 %797 }
  0xff   : > { %v803_v4 = vrot.slane %v798_v35, %v1297_v23 }
 0x100   : > { %v776_v12 = vadd.f32 %v772_v25, %v758_v24  ;;  %v777_v26 = vadd.f32 %v773_v3, %v759_v19 }
 0x101   : > { %v1078_v47 = vpop.eup %1077  ;;  %v804_v34 = vmul.f32 %v1406_v49, %v803_v4  ;;  %v805_v36 = vmul.f32 %v1408_v50, %v803_v4 }
 0x102   : > { %v1080_v27 = vpop.eup %1079  ;;  %v794_v53 = vadd.f32 %v790_v10, %v776_v12  ;;  %v795_v52 = vadd.f32 %v791_v46, %v777_v26  ;;  %v834_v28 = vmul.f32 %v1078_v47, %v833_v45 }
 0x103   : > { %v808_v20 = vrot.slane %v804_v34, 7  ;;  %v809_v54 = vrot.slane %v805_v36, 7  ;;  %v816_v56 = vpop.permute.xlu1 %815  ;;  %v835_v57 = vmul.f32 %v1080_v27, %v833_v45 }
 0x104   : > { %v821_v58 = vrot.slane %v816_v56, %v1297_v23  ;;  %v838_v1 = vrot.slane %v834_v28, 1 }
 0x105   : > { %v812_v59 = vadd.f32 %v808_v20, %v794_v53  ;;  %v813_v61 = vadd.f32 %v809_v54, %v795_v52  ;;  %v839_v2 = vrot.slane %v835_v57, 1 }
 0x106   : > { %v822_v62 = vmul.f32 %v1078_v47, %v821_v58  ;;  %v823_v63 = vmul.f32 %v1080_v27, %v821_v58 }
 0x108   : > { %v824_v5 = vadd.f32 %v822_v62, %v812_v59  ;;  %v825_v49 = vadd.f32 %v823_v63, %v813_v61 }
 0x10a   : > { %v842_v6 = vadd.f32 %v838_v1, %v824_v5  ;;  %v843_v50 = vadd.f32 %v839_v2, %v825_v49 }
 0x10c   : > { %v844_v30 = vsub.f32 0.0, %v842_v6  ;;  %v845_v7 = vsub.f32 0.0, %v843_v50 }
 0x10e   : > { %v846_v38 = vmul.f32 1.442695, %v844_v30  ;;  %v848_v8 = vmul.f32 1.442695, %v845_v7 }
 0x110   : > { %1081 = vpow2.f32 %v846_v38 }
 0x111   : > { %1083 = vpow2.f32 %v848_v8 }
 0x11a   : > { %v1082_v33 = vpop.eup %1081 }
 0x11b   : > { %v1084_v23 = vpop.eup %1083  ;;  %v850_v42 = vadd.f32 1.0, %v1082_v33 }
 0x11c   : > { %v851_v9 = vadd.f32 1.0, %v1084_v23 }
 0x11d   : > { %1085 = vrcp.f32 %v850_v42 }
 0x11e   : > { %1087 = vrcp.f32 %v851_v9 }
 0x127   : > { %v1086_v17 = vpop.eup %1085 }
 0x128   : > { %v1088_v29 = vpop.eup %1087 }
 0x129   : > { %v856_v11 = vcombine.low %v1086_v17, %v1088_v29 }
 0x12b   : > { %v863_v31 = vrot.slane %v856_v11, %v862_v18 }
 0x12d   : > { %v870_v44 = vrot.slane %v863_v31, %v862_v18 }
 0x12f   : > { %876 = vst.msk [vmem:[%s274_s25] sm:$0x3] %vm874_vm0, %v870_v44 }
 0x130   : > { %1102 = shalt.err (!%p1099_p3)
}
 0x131   : > { %s1103_s19 = scalar_lea.hbm %s1442_s14, 32  ;;  %s1107_s22 = scalar_lea.hbm %s1491_s7, 64 }
 0x132   : > { %p1104_p4 = scmp.ne.s32.totalorder %s1442_s14, %s1103_s19  ;;  %p1108_p9 = scmp.lt.u32.totalorder %s1442_s14, %s1491_s7 }
 0x133   : > { %p1109_p10 = scmp.lt.u32.totalorder %s1107_s22, %s1103_s19  ;;  %p1111_p12 = scmp.lt.u32.totalorder %s1103_s19, %s1442_s14 }
 0x134   : > { %p1105_p7 = pnand %p1104_p4, %p1246_p5 }
 0x135   : > { %p1110_p11 = por %p1109_p10, %p1108_p9 }
 0x136   : > { %p1106_p8 = pneg %p1105_p7 }
 0x137   : > { %p1112_p13 = por %p1111_p12, %p1110_p11 }
 0x139   : > { %p1113_p0 = pnand %p1112_p13, %p1106_p8 }
 0x13b   : > { %1116 = shalt.err (!%p1113_p0)
}
 0x13c   : > { %964 = dma.vmem_to_hbm [thread:$0]  (%p1246_p5), %s1444_s30, 32, %s1442_s14, %s878_s15  }
 0x13d PF: > { %p970_p1 = scmp.ge.s32.totalorder %s1151_s29, 2  ;;  %s904_s25 = sand.u32 1, %s1139_s26  }
 0x13e   : > { %s905_s9 = scalar_lea.sflag [#allocation4], %s904_s25 }
 0x13f   : > { %p967_p2 = pnand %p970_p1, %p1250_p6 }
 0x141   : > { %1134 = dma.done.wait (!%p967_p2), %s905_s9, 32  }
 0x142   : > { %1136 = vsyncadd (!%p967_p2), %s905_s9, 4294967264  ;;  %p19_p3 = scmp.ge.s32.totalorder %s1233_s8, 4   ;;  %s1494_s26 = smov %s1143_s27 }
 0x143   : > { %s1495_s27 = smov %s1147_s28  ;;  %s1496_s28 = smov %s1244_s11 }
 0x144   : > { %s1497_s29 = smov %s1233_s8  ;;  %21 = sbr.rel (!%p19_p3) target bundleno = 6 (0x6), region = 83 }
 0x14b   :  { %910 = vsyncpa [#allocation4], 1 }
 0x14c   :  { %912 = vsyncpa [#allocation4 + $0x1], 1 }

</bundles_post_ra>
